<compile_context>
chip_gen: v7x
topology: tpu7x:2x2x1
jax: 0.10.0
libtpu: 0.0.40
codegen_flags: <defaults>
</compile_context>

<pallas_src>
import jax
import jax.numpy as jnp
from jax import lax
from jax.experimental import pallas as pl
from jax.experimental.pallas import tpu as pltpu


# ----------------------------------------------------------------------------
# Kernel
# ----------------------------------------------------------------------------
def _res_conv_block2_kernel(x_ref, w1_ref, b1_ref, w2_ref, b2_ref, o_ref,
                            xpad_ref):
    # x_ref   : (bt, H, W*C)    f32  lane-dense activation block
    # w*_ref  : (3, W*C, W*C)   bf16 banded conv weights (BN scale folded in)
    # b*_ref  : (1, W*C)        f32  folded BN bias, tiled over W (lane-dense)
    # o_ref   : (bt, H, W*C)    f32  lane-dense output block
    # xpad_ref: (bt, H+2, W*C)  bf16 halo-padded staging scratch (H padding)
    BT, H, WC = x_ref.shape
    M = BT * H

    def banded_conv(w_ref):
        # out[h] = sum_dy  xpad[h + dy] @ B[dy]    (K = N = WC per band)
        acc = None
        for dy in range(3):                     # static unrolled, 3 MXU calls
            a = xpad_ref[:, pl.ds(dy, H), :].reshape(M, WC)        # bf16
            d = jnp.dot(a, w_ref[dy], preferred_element_type=jnp.float32)
            acc = d if acc is None else acc + d
        return acc                                                  # (M, WC) f32

    x = x_ref[...]                                                  # f32

    # Stage conv1 input: zero the two halo rows, one bf16 cast pass interior.
    zero_row = jnp.zeros((BT, WC), jnp.bfloat16)
    xpad_ref[:, 0, :] = zero_row
    xpad_ref[:, H + 1, :] = zero_row
    xpad_ref[:, pl.ds(1, H), :] = x.astype(jnp.bfloat16)

    # conv1 (+ folded BN1) -> bias + ReLU fused in one f32 VPU pass.
    y = jnp.maximum(banded_conv(w1_ref) + b1_ref[...], 0.0)        # (M, WC) f32

    # Stage conv2 input, reusing the scratch (halo rows are still zero).
    xpad_ref[:, pl.ds(1, H), :] = y.reshape(BT, H, WC).astype(jnp.bfloat16)

    # conv2 (+ folded BN2) -> bias + identity residual + final ReLU.
    z = banded_conv(w2_ref) + b2_ref[...]
    out = jnp.maximum(z + x.reshape(M, WC), 0.0)
    o_ref[...] = out.reshape(BT, H, WC).astype(o_ref.dtype)         # lane-dense


# ----------------------------------------------------------------------------
# Trace-time parameter folding
# ----------------------------------------------------------------------------
def _fold_bn(gamma, beta, mean, var, eps):
    scale = gamma / jnp.sqrt(var + eps)
    bias = beta - mean * scale
    return scale, bias


def _banded_weight(w_oihw, scale, W):
    """torch (O, I, ky, kx) conv weight -> (3, W*C, W*C) bf16 banded weight.

    Row index = w_in*C + ci, column index = w*C + co.  Block-tridiagonal in
    the W blocks; the structural zeros implement SAME padding along W.  BN
    scale is folded into the output channels.
    Note: size grows as (W*C)^2 — fine for W*C ~ O(128); for large W one
    would tile W with a 1-column halo and use a per-tile band.
    """
    ws = w_oihw * scale[:, None, None, None]            # (co, ci, ky, kx)
    wk = jnp.transpose(ws, (2, 3, 1, 0))                # (ky, kx, ci, co)
    # E[kx, w_in, w] = 1  iff  w_in == w + kx - 1
    E = jnp.stack([jnp.eye(W, k=1), jnp.eye(W, k=0), jnp.eye(W, k=-1)])
    B = jnp.einsum('xab,yxio->yaibo', E, wk)            # (ky, w_in, ci, w, co)
    WC_in = W * w_oihw.shape[1]
    WC_out = W * w_oihw.shape[0]
    return B.reshape(3, WC_in, WC_out).astype(jnp.bfloat16)


def _pick_batch_tile(N, H, WC, vmem_cap):
    """Largest batch tile whose live set fits VMEM, keeping >= 2 grid steps."""
    def live_bytes(bt):
        blk = bt * H * WC * 4                       # one f32 (bt, H, WC) block
        return (2 * blk                             # double-buffered input
                + 2 * blk                           # double-buffered output
                + bt * (H + 2) * WC * 2             # bf16 halo scratch
                + 4 * blk                           # f32 values (x, y, partials)
                + 2 * 2 * 3 * WC * WC * 2)          # 2 banded bf16 weights, x2 buf

    budget = int(0.6 * vmem_cap)
    divisors = [d for d in range(1, N + 1) if N % d == 0]
    fits = [d for d in divisors if live_bytes(d) <= budget]
    if not fits:
        # TODO(synk): for production-size H*W*C add a spatial grid axis with a
        # 2-row halo instead of degrading to bt=1 here.
        fits = [1]
    # Keep >= 2 grid steps so the "parallel" batch axis can shard across the
    # two TensorCores on v7x (harmless on single-TC v5e/v6e).
    multi = [d for d in fits if N // d >= 2]
    bt = max(multi) if multi else max(fits)
    return bt, live_bytes(bt)


# ----------------------------------------------------------------------------
# Wrapper
# ----------------------------------------------------------------------------
def res_conv_block2_pallas(x_nchw, params, eps=1e-5):
    """x_nchw: (N, cha, H, W) float32. Returns (N, cha, H, W)."""
    (w1_oihw, g1, be1, m1, v1, w2_oihw, g2, be2, m2, v2) = params
    N, C, H, W = x_nchw.shape
    WC = W * C
    assert w1_oihw.shape[0] == C, "identity residual requires ratio_rate == 1"

    s1, b1c = _fold_bn(g1, be1, m1, v1, eps)
    s2, b2c = _fold_bn(g2, be2, m2, v2, eps)
    w1 = _banded_weight(w1_oihw, s1, W)                       # (3, WC, WC) bf16
    w2 = _banded_weight(w2_oihw, s2, W)
    b1 = jnp.tile(b1c, W).reshape(1, WC).astype(jnp.float32)  # lane-dense bias
    b2 = jnp.tile(b2c, W).reshape(1, WC).astype(jnp.float32)

    try:
        vmem_cap = int(pltpu.get_tpu_info().vmem_capacity_bytes)
    except Exception:
        vmem_cap = 64 << 20                                   # v7x-safe fallback
    bt, live = _pick_batch_tile(N, H, WC, vmem_cap)
    vmem_limit = int(min(int(0.75 * vmem_cap), max(2 * live, 32 << 20)))

    # Layout: NCHW -> lane-dense (N, H, W*C).  In an NHWC pipeline these two
    # passes (and the inverse below) disappear; they are kept only because the
    # module's external contract is NCHW.
    x_lane = jnp.transpose(x_nchw, (0, 2, 3, 1)).reshape(N, H, WC)

    out = pl.pallas_call(
        _res_conv_block2_kernel,
        out_shape=jax.ShapeDtypeStruct((N, H, WC), x_nchw.dtype),
        grid_spec=pltpu.PrefetchScalarGridSpec(
            num_scalar_prefetch=0,
            grid=(N // bt,),
            in_specs=[
                pl.BlockSpec((bt, H, WC), lambda n: (n, 0, 0)),
                pl.BlockSpec(w1.shape, lambda n: (0, 0, 0)),
                pl.BlockSpec(b1.shape, lambda n: (0, 0)),
                pl.BlockSpec(w2.shape, lambda n: (0, 0, 0)),
                pl.BlockSpec(b2.shape, lambda n: (0, 0)),
            ],
            out_specs=pl.BlockSpec((bt, H, WC), lambda n: (n, 0, 0)),
            scratch_shapes=[pltpu.VMEM((bt, H + 2, WC), jnp.bfloat16)],
        ),
        compiler_params=pltpu.CompilerParams(
            dimension_semantics=("parallel",),
            vmem_limit_bytes=vmem_limit),
    )(x_lane, w1, b1, w2, b2)

    # (N, H, W*C) -> NCHW (interface requirement only).
    return jnp.transpose(out.reshape(N, H, W, C), (0, 3, 1, 2))


# ----------------------------------------------------------------------------
# Test harness
# ----------------------------------------------------------------------------
def make_params(key, cha, ratio_rate=1):
    # The module's residual add only type-checks when cha // ratio_rate == cha.
    c_mid = cha // ratio_rate
    assert c_mid == cha, "res_conv_block2 requires ratio_rate == 1"
    ks = jax.random.split(key, 4)
    w1 = jax.random.normal(ks[0], (c_mid, cha, 3, 3), jnp.float32) * 0.1
    w2 = jax.random.normal(ks[1], (c_mid, c_mid, 3, 3), jnp.float32) * 0.1

    def bn(k, c):
        kg, kb, km, kv = jax.random.split(k, 4)
        g = 1.0 + 0.1 * jax.random.normal(kg, (c,), jnp.float32)
        b = 0.1 * jax.random.normal(kb, (c,), jnp.float32)
        m = 0.1 * jax.random.normal(km, (c,), jnp.float32)
        v = 1.0 + 0.1 * jax.random.uniform(kv, (c,), jnp.float32)
        return g, b, m, v

    g1, be1, m1, v1 = bn(ks[2], c_mid)
    g2, be2, m2, v2 = bn(ks[3], c_mid)
    return (w1, g1, be1, m1, v1, w2, g2, be2, m2, v2)


def reference(x, params, eps=1e-5):
    """Pure-JAX f32 NCHW reference of res_conv_block2.forward."""
    w1, g1, be1, m1, v1, w2, g2, be2, m2, v2 = params
    dn = ('NCHW', 'OIHW', 'NCHW')

    def bn(y, g, b, m, v):
        sh = (1, -1, 1, 1)
        return ((y - m.reshape(sh)) / jnp.sqrt(v.reshape(sh) + eps)
                * g.reshape(sh) + b.reshape(sh))

    y = lax.conv_general_dilated(x, w1, (1, 1), 'SAME', dimension_numbers=dn,
                                 precision=lax.Precision.HIGHEST)
    y = jnp.maximum(bn(y, g1, be1, m1, v1), 0.0)
    y = lax.conv_general_dilated(y, w2, (1, 1), 'SAME', dimension_numbers=dn,
                                 precision=lax.Precision.HIGHEST)
    y = bn(y, g2, be2, m2, v2)
    return jnp.maximum(y + x, 0.0)


if __name__ == "__main__":
    key = jax.random.PRNGKey(0)
    kx, kp = jax.random.split(key)

    # cha=8, W=16 -> W*cha = 128: lane-dense loads, matmuls and stores.
    N, CHA, H, W = 2, 8, 16, 16
    x = jax.random.normal(kx, (N, CHA, H, W), jnp.float32)
    params = make_params(kp, CHA, ratio_rate=1)

    out = jax.block_until_ready(res_conv_block2_pallas(x, params))
    ref = jax.block_until_ready(reference(x, params))

    assert out.shape == (N, CHA, H, W)
    # bf16 matmul operands (f32 accumulation) -> small numerical difference.
    assert jnp.allclose(out, ref, atol=3e-2, rtol=3e-2), (
        "mismatch vs reference, max abs err = "
        f"{float(jnp.max(jnp.abs(out - ref)))}")

    print("KERNEL_OK")
</pallas_src>

<mosaic_0001>
module attributes {stable_mosaic.version = 11 : i64} {
  func.func @_res_conv_block2_kernel(%arg0: i32, %arg1: memref<1x16x128xf32, #tpu.memory_space<vmem>>, %arg2: memref<3x128x128xbf16, #tpu.memory_space<vmem>>, %arg3: memref<1x128xf32, #tpu.memory_space<vmem>>, %arg4: memref<3x128x128xbf16, #tpu.memory_space<vmem>>, %arg5: memref<1x128xf32, #tpu.memory_space<vmem>>, %arg6: memref<1x16x128xf32, #tpu.memory_space<vmem>>, %arg7: memref<1x18x128xbf16, #tpu.memory_space<vmem>>) attributes {dimension_semantics = [#tpu.dimension_semantics<parallel>], iteration_bounds = array<i64: 2>, scalar_prefetch = 0 : i64, scratch_operands = 1 : i64, tpu.core_type = #tpu.core_type<tc>, window_params = [{transform_indices = @transform_0, window_bounds = array<i64: 1, 16, 128>}, {pipeline_mode = #tpu.pipeline_mode<synchronous>, transform_indices = @transform_1, window_bounds = array<i64: 3, 128, 128>}, {pipeline_mode = #tpu.pipeline_mode<synchronous>, transform_indices = @transform_2, window_bounds = array<i64: 1, 128>}, {pipeline_mode = #tpu.pipeline_mode<synchronous>, transform_indices = @transform_3, window_bounds = array<i64: 3, 128, 128>}, {pipeline_mode = #tpu.pipeline_mode<synchronous>, transform_indices = @transform_4, window_bounds = array<i64: 1, 128>}, {transform_indices = @transform_5, window_bounds = array<i64: 1, 16, 128>}]} {
    %c0 = arith.constant 0 : index
    %c0_0 = arith.constant 0 : index
    %c0_1 = arith.constant 0 : index
    %0 = vector.load %arg1[%c0, %c0_0, %c0_1] : memref<1x16x128xf32, #tpu.memory_space<vmem>>, vector<1x16x128xf32>
    %cst = arith.constant 0.000000e+00 : bf16
    %1 = vector.broadcast %cst : bf16 to vector<1x128xbf16>
    %c0_2 = arith.constant 0 : index
    %c0_3 = arith.constant 0 : index
    %c0_4 = arith.constant 0 : index
    %2 = vector.load %arg7[%c0_2, %c0_3, %c0_4] : memref<1x18x128xbf16, #tpu.memory_space<vmem>>, vector<1x1x128xbf16>
    %3 = vector.shape_cast %2 : vector<1x1x128xbf16> to vector<1x128xbf16>
    %4 = vector.shape_cast %1 : vector<1x128xbf16> to vector<1x1x128xbf16>
    tpu.vector_store %arg7[%c0_2, %c0_3, %c0_4], %4 {strides = array<i32>} : memref<1x18x128xbf16, #tpu.memory_space<vmem>>, vector<1x1x128xbf16>,
    %c0_5 = arith.constant 0 : index
    %c17 = arith.constant 17 : index
    %c0_6 = arith.constant 0 : index
    %5 = vector.load %arg7[%c0_5, %c17, %c0_6] : memref<1x18x128xbf16, #tpu.memory_space<vmem>>, vector<1x1x128xbf16>
    %6 = vector.shape_cast %5 : vector<1x1x128xbf16> to vector<1x128xbf16>
    %7 = vector.shape_cast %1 : vector<1x128xbf16> to vector<1x1x128xbf16>
    tpu.vector_store %arg7[%c0_5, %c17, %c0_6], %7 {strides = array<i32>} : memref<1x18x128xbf16, #tpu.memory_space<vmem>>, vector<1x1x128xbf16>,
    %8 = arith.truncf %0 : vector<1x16x128xf32> to vector<1x16x128xbf16>
    %c0_7 = arith.constant 0 : index
    %c1 = arith.constant 1 : index
    %c0_8 = arith.constant 0 : index
    %9 = vector.load %arg7[%c0_7, %c1, %c0_8] : memref<1x18x128xbf16, #tpu.memory_space<vmem>>, vector<1x16x128xbf16>
    tpu.vector_store %arg7[%c0_7, %c1, %c0_8], %8 {strides = array<i32>} : memref<1x18x128xbf16, #tpu.memory_space<vmem>>, vector<1x16x128xbf16>,
    %c0_9 = arith.constant 0 : index
    %c0_10 = arith.constant 0 : index
    %c0_11 = arith.constant 0 : index
    %10 = vector.load %arg7[%c0_9, %c0_10, %c0_11] : memref<1x18x128xbf16, #tpu.memory_space<vmem>>, vector<1x16x128xbf16>
    %11 = vector.shape_cast %10 : vector<1x16x128xbf16> to vector<16x128xbf16>
    %c0_12 = arith.constant 0 : index
    %c0_13 = arith.constant 0 : index
    %c0_14 = arith.constant 0 : index
    %12 = vector.load %arg2[%c0_12, %c0_13, %c0_14] : memref<3x128x128xbf16, #tpu.memory_space<vmem>>, vector<1x128x128xbf16>
    %13 = vector.shape_cast %12 : vector<1x128x128xbf16> to vector<128x128xbf16>
    %cst_15 = arith.constant dense<0.000000e+00> : vector<16x128xf32>
    %14 = tpu.matmul %11, %13, %cst_15 {dimension_numbers = #tpu.dot_dimension_numbers<[1], [0], [0], [1], [0, 0, 1, 1], [], []>} : vector<16x128xbf16>, vector<128x128xbf16>, vector<16x128xf32> -> vector<16x128xf32>
    %c0_16 = arith.constant 0 : index
    %c1_17 = arith.constant 1 : index
    %c0_18 = arith.constant 0 : index
    %15 = vector.load %arg7[%c0_16, %c1_17, %c0_18] : memref<1x18x128xbf16, #tpu.memory_space<vmem>>, vector<1x16x128xbf16>
    %16 = vector.shape_cast %15 : vector<1x16x128xbf16> to vector<16x128xbf16>
    %c1_19 = arith.constant 1 : index
    %c0_20 = arith.constant 0 : index
    %c0_21 = arith.constant 0 : index
    %17 = vector.load %arg2[%c1_19, %c0_20, %c0_21] : memref<3x128x128xbf16, #tpu.memory_space<vmem>>, vector<1x128x128xbf16>
    %18 = vector.shape_cast %17 : vector<1x128x128xbf16> to vector<128x128xbf16>
    %cst_22 = arith.constant dense<0.000000e+00> : vector<16x128xf32>
    %19 = tpu.matmul %16, %18, %cst_22 {dimension_numbers = #tpu.dot_dimension_numbers<[1], [0], [0], [1], [0, 0, 1, 1], [], []>} : vector<16x128xbf16>, vector<128x128xbf16>, vector<16x128xf32> -> vector<16x128xf32>
    %20 = arith.addf %14, %19 : vector<16x128xf32>
    %c0_23 = arith.constant 0 : index
    %c2 = arith.constant 2 : index
    %c0_24 = arith.constant 0 : index
    %21 = vector.load %arg7[%c0_23, %c2, %c0_24] : memref<1x18x128xbf16, #tpu.memory_space<vmem>>, vector<1x16x128xbf16>
    %22 = vector.shape_cast %21 : vector<1x16x128xbf16> to vector<16x128xbf16>
    %c2_25 = arith.constant 2 : index
    %c0_26 = arith.constant 0 : index
    %c0_27 = arith.constant 0 : index
    %23 = vector.load %arg2[%c2_25, %c0_26, %c0_27] : memref<3x128x128xbf16, #tpu.memory_space<vmem>>, vector<1x128x128xbf16>
    %24 = vector.shape_cast %23 : vector<1x128x128xbf16> to vector<128x128xbf16>
    %cst_28 = arith.constant dense<0.000000e+00> : vector<16x128xf32>
    %25 = tpu.matmul %22, %24, %cst_28 {dimension_numbers = #tpu.dot_dimension_numbers<[1], [0], [0], [1], [0, 0, 1, 1], [], []>} : vector<16x128xbf16>, vector<128x128xbf16>, vector<16x128xf32> -> vector<16x128xf32>
    %26 = arith.addf %20, %25 : vector<16x128xf32>
    %c0_29 = arith.constant 0 : index
    %c0_30 = arith.constant 0 : index
    %27 = vector.load %arg3[%c0_29, %c0_30] : memref<1x128xf32, #tpu.memory_space<vmem>>, vector<1x128xf32>
    %28 = vector.broadcast %27 : vector<1x128xf32> to vector<16x128xf32>
    %29 = arith.addf %26, %28 : vector<16x128xf32>
    %cst_31 = arith.constant 0.000000e+00 : f32
    %30 = vector.broadcast %cst_31 : f32 to vector<16x128xf32>
    %31 = arith.maximumf %29, %30 : vector<16x128xf32>
    %32 = vector.shape_cast %31 : vector<16x128xf32> to vector<1x16x128xf32>
    %33 = arith.truncf %32 : vector<1x16x128xf32> to vector<1x16x128xbf16>
    %c0_32 = arith.constant 0 : index
    %c1_33 = arith.constant 1 : index
    %c0_34 = arith.constant 0 : index
    %34 = vector.load %arg7[%c0_32, %c1_33, %c0_34] : memref<1x18x128xbf16, #tpu.memory_space<vmem>>, vector<1x16x128xbf16>
    tpu.vector_store %arg7[%c0_32, %c1_33, %c0_34], %33 {strides = array<i32>} : memref<1x18x128xbf16, #tpu.memory_space<vmem>>, vector<1x16x128xbf16>,
    %c0_35 = arith.constant 0 : index
    %c0_36 = arith.constant 0 : index
    %c0_37 = arith.constant 0 : index
    %35 = vector.load %arg7[%c0_35, %c0_36, %c0_37] : memref<1x18x128xbf16, #tpu.memory_space<vmem>>, vector<1x16x128xbf16>
    %36 = vector.shape_cast %35 : vector<1x16x128xbf16> to vector<16x128xbf16>
    %c0_38 = arith.constant 0 : index
    %c0_39 = arith.constant 0 : index
    %c0_40 = arith.constant 0 : index
    %37 = vector.load %arg4[%c0_38, %c0_39, %c0_40] : memref<3x128x128xbf16, #tpu.memory_space<vmem>>, vector<1x128x128xbf16>
    %38 = vector.shape_cast %37 : vector<1x128x128xbf16> to vector<128x128xbf16>
    %cst_41 = arith.constant dense<0.000000e+00> : vector<16x128xf32>
    %39 = tpu.matmul %36, %38, %cst_41 {dimension_numbers = #tpu.dot_dimension_numbers<[1], [0], [0], [1], [0, 0, 1, 1], [], []>} : vector<16x128xbf16>, vector<128x128xbf16>, vector<16x128xf32> -> vector<16x128xf32>
    %c0_42 = arith.constant 0 : index
    %c1_43 = arith.constant 1 : index
    %c0_44 = arith.constant 0 : index
    %40 = vector.load %arg7[%c0_42, %c1_43, %c0_44] : memref<1x18x128xbf16, #tpu.memory_space<vmem>>, vector<1x16x128xbf16>
    %41 = vector.shape_cast %40 : vector<1x16x128xbf16> to vector<16x128xbf16>
    %c1_45 = arith.constant 1 : index
    %c0_46 = arith.constant 0 : index
    %c0_47 = arith.constant 0 : index
    %42 = vector.load %arg4[%c1_45, %c0_46, %c0_47] : memref<3x128x128xbf16, #tpu.memory_space<vmem>>, vector<1x128x128xbf16>
    %43 = vector.shape_cast %42 : vector<1x128x128xbf16> to vector<128x128xbf16>
    %cst_48 = arith.constant dense<0.000000e+00> : vector<16x128xf32>
    %44 = tpu.matmul %41, %43, %cst_48 {dimension_numbers = #tpu.dot_dimension_numbers<[1], [0], [0], [1], [0, 0, 1, 1], [], []>} : vector<16x128xbf16>, vector<128x128xbf16>, vector<16x128xf32> -> vector<16x128xf32>
    %45 = arith.addf %39, %44 : vector<16x128xf32>
    %c0_49 = arith.constant 0 : index
    %c2_50 = arith.constant 2 : index
    %c0_51 = arith.constant 0 : index
    %46 = vector.load %arg7[%c0_49, %c2_50, %c0_51] : memref<1x18x128xbf16, #tpu.memory_space<vmem>>, vector<1x16x128xbf16>
    %47 = vector.shape_cast %46 : vector<1x16x128xbf16> to vector<16x128xbf16>
    %c2_52 = arith.constant 2 : index
    %c0_53 = arith.constant 0 : index
    %c0_54 = arith.constant 0 : index
    %48 = vector.load %arg4[%c2_52, %c0_53, %c0_54] : memref<3x128x128xbf16, #tpu.memory_space<vmem>>, vector<1x128x128xbf16>
    %49 = vector.shape_cast %48 : vector<1x128x128xbf16> to vector<128x128xbf16>
    %cst_55 = arith.constant dense<0.000000e+00> : vector<16x128xf32>
    %50 = tpu.matmul %47, %49, %cst_55 {dimension_numbers = #tpu.dot_dimension_numbers<[1], [0], [0], [1], [0, 0, 1, 1], [], []>} : vector<16x128xbf16>, vector<128x128xbf16>, vector<16x128xf32> -> vector<16x128xf32>
    %51 = arith.addf %45, %50 : vector<16x128xf32>
    %c0_56 = arith.constant 0 : index
    %c0_57 = arith.constant 0 : index
    %52 = vector.load %arg5[%c0_56, %c0_57] : memref<1x128xf32, #tpu.memory_space<vmem>>, vector<1x128xf32>
    %53 = vector.broadcast %52 : vector<1x128xf32> to vector<16x128xf32>
    %54 = arith.addf %51, %53 : vector<16x128xf32>
    %55 = vector.shape_cast %0 : vector<1x16x128xf32> to vector<16x128xf32>
    %56 = arith.addf %54, %55 : vector<16x128xf32>
    %cst_58 = arith.constant 0.000000e+00 : f32
    %57 = vector.broadcast %cst_58 : f32 to vector<16x128xf32>
    %58 = arith.maximumf %56, %57 : vector<16x128xf32>
    %59 = vector.shape_cast %58 : vector<16x128xf32> to vector<1x16x128xf32>
    %c0_59 = arith.constant 0 : index
    %c0_60 = arith.constant 0 : index
    %c0_61 = arith.constant 0 : index
    %60 = vector.load %arg6[%c0_59, %c0_60, %c0_61] : memref<1x16x128xf32, #tpu.memory_space<vmem>>, vector<1x16x128xf32>
    tpu.vector_store %arg6[%c0_59, %c0_60, %c0_61], %59 {strides = array<i32>} : memref<1x16x128xf32, #tpu.memory_space<vmem>>, vector<1x16x128xf32>,
    return
  }
  func.func @transform_0(%arg0: i32) -> (i32, i32, i32) {
    %c0_i32 = arith.constant 0 : i32
    %c0_i32_0 = arith.constant 0 : i32
    %c0_i32_1 = arith.constant 0 : i32
    return %arg0, %c0_i32, %c0_i32_0 : i32, i32, i32
  }
  func.func @transform_1(%arg0: i32) -> (i32, i32, i32) {
    %c0_i32 = arith.constant 0 : i32
    %c0_i32_0 = arith.constant 0 : i32
    %c0_i32_1 = arith.constant 0 : i32
    %c0_i32_2 = arith.constant 0 : i32
    return %c0_i32, %c0_i32_0, %c0_i32_1 : i32, i32, i32
  }
  func.func @transform_2(%arg0: i32) -> (i32, i32) {
    %c0_i32 = arith.constant 0 : i32
    %c0_i32_0 = arith.constant 0 : i32
    %c0_i32_1 = arith.constant 0 : i32
    return %c0_i32, %c0_i32_0 : i32, i32
  }
  func.func @transform_3(%arg0: i32) -> (i32, i32, i32) {
    %c0_i32 = arith.constant 0 : i32
    %c0_i32_0 = arith.constant 0 : i32
    %c0_i32_1 = arith.constant 0 : i32
    %c0_i32_2 = arith.constant 0 : i32
    return %c0_i32, %c0_i32_0, %c0_i32_1 : i32, i32, i32
  }
  func.func @transform_4(%arg0: i32) -> (i32, i32) {
    %c0_i32 = arith.constant 0 : i32
    %c0_i32_0 = arith.constant 0 : i32
    %c0_i32_1 = arith.constant 0 : i32
    return %c0_i32, %c0_i32_0 : i32, i32
  }
  func.func @transform_5(%arg0: i32) -> (i32, i32, i32) {
    %c0_i32 = arith.constant 0 : i32
    %c0_i32_0 = arith.constant 0 : i32
    %c0_i32_1 = arith.constant 0 : i32
    return %arg0, %c0_i32, %c0_i32_0 : i32, i32, i32
  }
}

</mosaic_0001>

<bundles_post_ra>
// kernel: tpu_custom_call.1
= control target key start
LH: loop header
LB: loop body
LE: loop exit
PB: predicated region body
PF: predicated region fallthrough
CT: control target
= control target key end

     0   :  { %10 = vsyncpa [#allocation4], 0  ;;  %s2143_s0 = inlined_call_operand.hbm [shape: f32[2,16,128], index: 0, kind: input, shape index: {}]   ;;  %s2144_s1 = inlined_call_operand.hbm [shape: bf16[3,128,128], index: 1, kind: input, shape index: {}]   ;;  %s2145_s2 = inlined_call_operand.vmem [shape: f32[1,128], index: 2, kind: input, shape index: {}]   ;;  %s2146_s3 = inlined_call_operand.hbm [shape: bf16[3,128,128], index: 3, kind: input, shape index: {}]   ;;  %s2147_s4 = inlined_call_operand.vmem [shape: f32[1,128], index: 4, kind: input, shape index: {}]   ;;  %s2148_s5 = inlined_call_operand.hbm [shape: f32[2,16,128], index: 5, kind: output, shape index: {}]  }
   0x1   :  { %12 = vsyncpa [#allocation4 + $0x1], 0 }
   0x2   :  { %13 = vsyncpa [#allocation7], 0 }
   0x3   :  { %14 = vsyncpa [#allocation5], 0 }
   0x4   :  { %16 = vsyncpa [#allocation5 + $0x1], 0  ;;  %s1780_s18 = smov 0   ;;  %s1782_s19 = smov 0  }
   0x5   :  { %s1784_s20 = smov 0   ;;  %s1786_s21 = smov 0  }
   0x6 LB: > { %s1801_s22 = sadd.s32 4294967295, %s1736_s21   ;;  %s1193_s23 = sadd.s32 4294967294, %s1736_s21   ;;  %s1736_s21 = sphi %s1786_s21, %s2176_s21   ;;  %s1732_s20 = sphi %s1784_s20, %s2175_s20   ;;  %s1728_s19 = sphi %s1782_s19, %s2174_s19   ;;  %s1724_s18 = sphi %s1780_s18, %s2173_s18  }
   0x7   : > { %p42_p0 = scmp.ne.s32.totalorder %s1728_s19, %s1724_s18  ;;  %p2149_p1 = scmp.eq.s32.totalorder %s1801_s22, 0 }
   0x8   : > { %p156_p3 = scmp.eq.s32.totalorder %s1193_s23, 1  ;;  %p1194_p5 = scmp.ge.s32.totalorder %s1736_s21, 1 }
   0x9   : > { %p1810_p4 = por %p2149_p1, %p42_p0  ;;  %p163_p7 = scmp.lt.s32.totalorder %s1736_s21, 3 }
   0xa   : > { %p1815_p6 = por %p156_p3, %p42_p0  ;;  %s1738_s27 = smov [#allocation6]  }
   0xb   : > { %s2152_s24 = scalar_select %p1810_p4, 1, 0 }
   0xc   : > { %s2153_s25 = scalar_select %p1815_p6, 1, 0 }
   0xd   : > { %p1820_p8 = pnand %p1194_p5, %p163_p7  ;;  %s175_s28 = sshll.u32 %s1738_s27, 4  ;;  %s1824_s28 = int_to_ptr.vmem [resolvable:$true] %s175_s28 }
   0xe   : > { %s1739_s30 = smov [#allocation8]   ;;  %s1580_s9 = scalar_lea.hbm %s2144_s1, 3072 }
   0xf   : > { %p1463_p9 = pneg %p1820_p8  ;;  %s191_s6 = sshll.u32 %s1739_s30, 4  ;;  %s1835_s6 = int_to_ptr.vmem [resolvable:$true] %s191_s6 }
  0x10   : > { %p1581_p12 = scmp.ne.s32.totalorder %s2144_s1, %s1580_s9  ;;  %p1587_p5 = scmp.lt.u32.totalorder %s1580_s9, %s2144_s1 }
  0x11   : > { %p1831_p11 = pnand %p1463_p9, %p2149_p1 }
  0x13   : > { %p1582_p13 = pneg %p1831_p11 }
  0x15   : > { %p1583_p0 = pnand %p1582_p13, %p1581_p12 }
  0x17   : > { %p1584_p3 = pneg %p1583_p0 }
  0x19   : > { %p1589_p7 = pnand %p1587_p5, %p1584_p3 }
  0x1b   : > { %1592 = shalt.err (!%p1589_p7)
}
  0x1c   : > { %s1593_s14 = scalar_lea.vmem %s1824_s28, 3072  ;;  %p1601_p2 = scmp.lt.s32.totalorder %s1824_s28, %s1824_s28 }
  0x1d   : > { %p1594_p9 = scmp.ne.s32.totalorder %s1824_s28, %s1593_s14  ;;  %p1602_p12 = scmp.lt.s32.totalorder %s1593_s14, %s1593_s14 }
  0x1f   : > { %p1596_p10 = pnand %p1594_p9, %p1582_p13  ;;  %p1603_p0 = por %p1602_p12, %p1601_p2 }
  0x21   : > { %p1597_p1 = pneg %p1596_p10 }
  0x23   : > { %p1604_p6 = pnand %p1603_p0, %p1597_p1 }
  0x25   : > { %1607 = shalt.err (!%p1604_p6)
}
  0x26   : > { %s1740_s15 = smov 64   ;;  %s1741_s16 = smov 4  }
  0x27   : > { %1466 = dma.hbm_to_vmem [thread:$0]  (!%p1831_p11), %s2144_s1, 3072, %s1824_s28, [#allocation7], %s1740_s15, %s1740_s15, %s1741_s16  }
  0x28   : > { %s1608_s7 = scalar_lea.hbm %s2146_s3, 3072 }
  0x29   : > { %p1609_p2 = scmp.ne.s32.totalorder %s2146_s3, %s1608_s7  ;;  %p1615_p10 = scmp.lt.u32.totalorder %s1608_s7, %s2146_s3 }
  0x2b   : > { %p1611_p1 = pnand %p1609_p2, %p1582_p13 }
  0x2d   : > { %p1612_p6 = pneg %p1611_p1 }
  0x2f   : > { %p1617_p3 = pnand %p1615_p10, %p1612_p6 }
  0x31   : > { %1620 = shalt.err (!%p1617_p3)
}
  0x32   : > { %s1621_s28 = scalar_lea.vmem %s1835_s6, 3072  ;;  %p1629_p12 = scmp.lt.s32.totalorder %s1835_s6, %s1835_s6 }
  0x33   : > { %p1622_p5 = scmp.ne.s32.totalorder %s1835_s6, %s1621_s28  ;;  %p1630_p0 = scmp.lt.s32.totalorder %s1621_s28, %s1621_s28 }
  0x35   : > { %p1624_p7 = pnand %p1622_p5, %p1582_p13  ;;  %p1631_p2 = por %p1630_p0, %p1629_p12 }
  0x37   : > { %p1625_p9 = pneg %p1624_p7 }
  0x39   : > { %p1632_p1 = pnand %p1631_p2, %p1625_p9 }
  0x3b   : > { %1635 = shalt.err (!%p1632_p1)
}
  0x3c   : > { %1469 = dma.hbm_to_vmem [thread:$0]  (!%p1831_p11), %s2146_s3, 3072, %s1835_s6, [#allocation7], %s1740_s15, %s1740_s15, %s1741_s16  }
  0x3d   : > { %s1890_s14 = sadd.s32 1, %s1736_s21   ;;  %s29_s29 = sadd.s32 1, %s1732_s20 }
  0x3e   : > { %s26_s17 = ssub.s32 %s1736_s21, %s1890_s14  ;;  %p36_p13 = scmp.ne.s32.totalorder %s1732_s20, %s1728_s19 }
  0x3f   : > { %p27_p6 = scmp.eq.s32.totalorder %s26_s17, 0  ;;  %p37_p10 = scmp.eq.s32.totalorder %s1736_s21, 0 }
  0x40   : > { %p2156_p3 = scmp.eq.s32.totalorder %s1801_s22, 1  ;;  %p1480_p7 = scmp.lt.s32.totalorder %s1736_s21, 2 }
  0x41   : > { %s1906_s27 = scalar_select %p27_p6, %s1732_s20, %s29_s29  }
  0x42   : > { %p1900_p5 = por %p2156_p3, %p36_p13  ;;  %p38_p9 = por %p37_p10, %p36_p13 }
  0x43   : > { %s208_s30 = sand.u32 1, %s1732_s20   ;;  %s1271_s6 = sshll.u32 %s1736_s21, 8 }
  0x44   : > { %s2157_s23 = scalar_select %p1900_p5, 1, 0 }
  0x45   : > { %s1198_s7 = sshll.u32 %s208_s30, 4  ;;  %s1913_s8 = scalar_lea.hbm %s2143_s0, %s1271_s6 }
  0x46   : > { %s212_s9 = scalar_lea.vmem [#allocation3], %s1198_s7  ;;  %p1917_p11 = pnand %p1480_p7, %p38_p9 }
  0x47   : > { %s219_s10 = sshll.u32 %s212_s9, 4  ;;  %s1921_s28 = scalar_lea.sflag [#allocation4], %s208_s30  ;;  %s1915_s10 = int_to_ptr.vmem [resolvable:$true] %s219_s10 }
  0x48   : > { %s1636_s12 = scalar_lea.hbm %s1913_s8, 256  ;;  %p1638_p0 = pneg %p1917_p11 }
  0x49   : > { %p1637_p12 = scmp.ne.s32.totalorder %s1913_s8, %s1636_s12  ;;  %s1641_s17 = scalar_lea.hbm %s2143_s0, 512 }
  0x4a   : > { %p1642_p13 = scmp.lt.u32.totalorder %s1913_s8, %s2143_s0  ;;  %p1643_p6 = scmp.lt.u32.totalorder %s1641_s17, %s1636_s12 }
  0x4b   : > { %p1639_p2 = pnand %p1638_p0, %p1637_p12  ;;  %p1645_p3 = scmp.lt.u32.totalorder %s1636_s12, %s1913_s8 }
  0x4c   : > { %p1644_p10 = por %p1643_p6, %p1642_p13 }
  0x4d   : > { %p1640_p1 = pneg %p1639_p2 }
  0x4e   : > { %p1646_p7 = por %p1645_p3, %p1644_p10 }
  0x50   : > { %p1647_p9 = pnand %p1646_p7, %p1640_p1 }
  0x52   : > { %1650 = shalt.err (!%p1647_p9)
}
  0x53   : > { %s1651_s30 = scalar_lea.vmem %s1915_s10, 256  ;;  %s1742_s15 = smov [#allocation3]  }
  0x54   : > { %p1652_p12 = scmp.ne.s32.totalorder %s1915_s10, %s1651_s30  ;;  %s1656_s16 = sshll.u32 %s1742_s15, 4  ;;  %s1657_s16 = int_to_ptr.vmem [resolvable:$false] %s1656_s16 }
  0x55   : > { %s1658_s9 = scalar_lea.vmem %s1657_s16, 512  ;;  %p1659_p4 = scmp.lt.s32.totalorder %s1915_s10, %s1657_s16 }
  0x56   : > { %p1654_p2 = pnand %p1652_p12, %p1638_p0  ;;  %p1660_p13 = scmp.lt.s32.totalorder %s1658_s9, %s1651_s30 }
  0x58   : > { %p1655_p5 = pneg %p1654_p2  ;;  %p1661_p6 = por %p1660_p13, %p1659_p4 }
  0x5a   : > { %p1662_p10 = pnand %p1661_p6, %p1655_p5 }
  0x5c   : > { %1665 = shalt.err (!%p1662_p10)
}
  0x5d   : > { %s1743_s12 = smov 128   ;;  %s1744_s13 = smov 8  }
  0x5e   : > { %1473 = dma.hbm_to_vmem [thread:$0]  (!%p1917_p11), %s1913_s8, 256, %s1915_s10, %s1921_s28, %s1743_s12, %s1743_s12, %s1744_s13  }
  0x5f   : > { %231 = sbr.rel (%p1820_p8) target bundleno = 687 (0x2af), region = 40  ;;  %s1952_s29 = sand.u32 (!%p1820_p8), 1, %s1728_s19  }
  0x60   : > { %s1202_s17 = sshll.u32 (!%p1820_p8), %s1952_s29, 4  ;;  %s234_s7 = scalar_lea.sflag (!%p1820_p8), [#allocation4], %s1952_s29 }
  0x61   : > { %s1958_s6 = scalar_lea.vmem (!%p1820_p8), [#allocation3], %s1202_s17  ;;  %p2159_p4 = scmp.ne.s32.totalorder (!%p1820_p8), %s2152_s24, 0 }
  0x66   : > { %1711 = dma.done.wait (%p2159_p4), %s234_s7, 256  }
  0x67   : > { %1713 = vsyncadd (%p2159_p4), %s234_s7, 4294967040  ;;  %p2160_p5 = scmp.eq.s32.totalorder %s1801_s22, 0 }
  0x69   : > { %1715 = dma.done.wait (%p2160_p5), [#allocation7], 6144   ;;  %p2161_p8 = pmov %p2160_p5 }
  0x6a   : > { %v1745_v0 = vmov 0.0   ;;  %vm1746_vm0 = vmmov 0   ;;  %v1526_v1 = vld [vmem:[#allocation6 + $0x40] sm:$0xff]   ;;  %v1528_v3 = vld [vmem:[#allocation6 + $0x48] sm:$0xff]   ;;  %v1530_v5 = vld [vmem:[#allocation6 + $0x50] sm:$0xff]   ;;  %vm275_vm1 = vcmask 1040384  }
  0x6b   : > { %1717 = vsyncadd (%p2161_p8), [#allocation7], 4294961152  ;;  %1331 = vmatprep.subr.bf16.mxu0 %v1745_v0  ;;  %1351 = vmatprep.subr.bf16.mxu1 %v1745_v0  ;;  %v1527_v2 = vld [vmem:[#allocation6] sm:$0xff]   ;;  %v1529_v4 = vld [vmem:[#allocation6 + $0x8] sm:$0xff]   ;;  %vm276_vm2 = vsmask.f32 256 }
  0x6c   : > { %1347 = vmatprep.mubr.msk.bf16.mxu0 %vm1746_vm0, %v1745_v0  ;;  %1367 = vmatprep.mubr.msk.bf16.mxu1 %vm1746_vm0, %v1745_v0  ;;  %v1531_v6 = vld [vmem:[#allocation6 + $0x10] sm:$0xff]   ;;  %vm281_vm3 = vsmask.f32 7938  ;;  %v1532_v7 = vld [vmem:[#allocation6 + $0x58] sm:$0xff]   ;;  %vm1981_vm4 = vmand %vm275_vm1, %vm276_vm2  ;;  %vm292_vm6 = vsmask.f32 4368 }
  0x6d   : > { %1332 = vmatpush3.bf16.msra.mxu0 %v1526_v1  ;;  %1352 = vmatpush3.bf16.msra.mxu1 %v1527_v2  ;;  %v1533_v8 = vld [vmem:[#allocation6 + $0x18] sm:$0xff]   ;;  %vm1986_vm5 = vmand %vm275_vm1, %vm281_vm3  ;;  %v1534_v11 = vld [vmem:[#allocation6 + $0x60] sm:$0xff]   ;;  %vm314_vm7 = vcmask 1043456   ;;  %vm367_vm10 = vsmask.f32 7424  ;;  %vm581_vm11 = vcmask 1046528  }
  0x6e   : > { %1333 = vmatprep.subr.bf16.mxu0 %v1745_v0  ;;  %1353 = vmatprep.subr.bf16.mxu1 %v1745_v0  ;;  %v1535_v12 = vld [vmem:[#allocation6 + $0x20] sm:$0xff]   ;;  %v1996_v14 = vld [vmem:[%s1958_s6 + $0x8] sm:$0xff]  ;;  %v278_v15 = vld [vmem:[#allocation2] sm:$0x1]  ;;  %s271_s11 = scalar_lea.vmem [#allocation9], %s1202_s17  ;;  %s1276_s30 = sshll.u32 %s1801_s22, 8 }
  0x6f   : > { %v1993_v13 = vld [vmem:[%s1958_s6] sm:$0xff]  ;;  %v1536_v16 = vld [vmem:[#allocation6 + $0x68] sm:$0xff]   ;;  %v279_v17 = vsel %vm1981_vm4, 0, %v278_v15  ;;  %v283_v18 = vld [vmem:[#allocation2 + $0x8] sm:$0x1]  ;;  %v1273_v20 = vpack.c.bf16 %v1996_v14, %v1996_v14  ;;  %s1101_s28 = sshll.u32 %s271_s11, 4  ;;  %s2099_s9 = scalar_lea.hbm %s2148_s5, %s1276_s30  ;;  %s2093_s28 = int_to_ptr.vmem [resolvable:$true] %s1101_s28 }
  0x70   : > { %v1272_v19 = vpack.c.bf16 %v1993_v13, %v1993_v13  ;;  %v1537_v21 = vld [vmem:[#allocation6 + $0x28] sm:$0xff]   ;;  %280 = vst [vmem:[#allocation2] sm:$0x1] %v279_v17  ;;  %v284_v22 = vsel %vm1986_vm5, 0, %v283_v18  ;;  %vm2010_vm8 = vmor %vm276_vm2, %vm292_vm6  ;;  %v1538_v30 = vld [vmem:[#allocation6 + $0x70] sm:$0xff]   ;;  %s1088_s12 = scalar_lea.sflag [#allocation5], %s1952_s29 }
  0x71   : > { %1334 = vmatpush3.bf16.msra.mxu0 %v1528_v3  ;;  %1354 = vmatpush3.bf16.msra.mxu1 %v1529_v4  ;;  %285 = vst [vmem:[#allocation2 + $0x8] sm:$0x1] %v284_v22  ;;  %v303_v25 = vshrl.u32 %v1273_v20, 16  ;;  %v306_v26 = vshll.u32 %v1273_v20, 16  ;;  %v1539_v31 = vld [vmem:[#allocation6 + $0x30] sm:$0xff]   ;;  %vm2016_vm9 = vmand %vm314_vm7, %vm281_vm3  ;;  %v1540_v37 = vld [vmem:[#allocation6 + $0x78] sm:$0xff]  }
  0x72   : > { %1335 = vmatprep.subr.bf16.mxu0 %v1745_v0  ;;  %1355 = vmatprep.subr.bf16.mxu1 %v1745_v0  ;;  %v295_v23 = vshrl.u32 %v1272_v19, 16  ;;  %v298_v24 = vshll.u32 %v1272_v19, 16  ;;  %v1541_v40 = vld [vmem:[#allocation6 + $0x38] sm:$0xff]   ;;  %v1544_v53 = vld [vmem:[#allocation6 + $0x80] sm:$0xff]   ;;  %v1545_v56 = vld [vmem:[#allocation6 + $0x88] sm:$0xff]   ;;  %s1666_s13 = scalar_lea.vmem %s2093_s28, 256 }
  0x73   : > { %v305_v29 = vrot.slane %v303_v25, 7  ;;  %v1546_v57 = vld [vmem:[#allocation6 + $0x90] sm:$0xff]   ;;  %v1547_v58 = vld [vmem:[#allocation6 + $0x98] sm:$0xff]   ;;  %v1548_v59 = vld [vmem:[#allocation6 + $0xa0] sm:$0xff]   ;;  %p1667_p11 = scmp.ne.s32.totalorder %s2093_s28, %s1666_s13  ;;  %p2170_p0 = scmp.ne.s32.totalorder %s2157_s23, 0 }
  0x74   : > { %v297_v28 = vrot.slane %v295_v23, 7  ;;  %v1549_v60 = vld [vmem:[#allocation6 + $0xa8] sm:$0xff]   ;;  %v1550_v62 = vld [vmem:[#allocation6 + $0xb0] sm:$0xff]   ;;  %v1551_v1 = vld [vmem:[#allocation6 + $0xb8] sm:$0xff]   ;;  %s1747_s22 = smov [#allocation9]  }
  0x75   : > { %1336 = vmatpush3.bf16.msra.mxu0 %v1530_v5  ;;  %1356 = vmatpush3.bf16.msra.mxu1 %v1531_v6  ;;  %v308_v34 = vor.u32 %v306_v26, %v305_v29  ;;  %v310_v35 = vrot.slane %v305_v29, 4  ;;  %v1553_v5 = vld [vmem:[#allocation8] sm:$0xff]   ;;  %v1554_v6 = vld [vmem:[#allocation8 + $0x8] sm:$0xff]   ;;  %v1564_v19 = vld [vmem:[#allocation8 + $0x30] sm:$0xff]   ;;  %p1668_p1 = pnand %p1667_p11, %p2170_p0  ;;  %s1670_s17 = sshll.u32 %s1747_s22, 4  ;;  %s1671_s17 = int_to_ptr.vmem [resolvable:$false] %s1670_s17 }
  0x76   : > { %1337 = vmatprep.subr.bf16.mxu0 %v1745_v0  ;;  %1357 = vmatprep.subr.bf16.mxu1 %v1745_v0  ;;  %v300_v32 = vor.u32 %v298_v24, %v297_v28  ;;  %v301_v33 = vrot.slane %v297_v28, 4  ;;  %v1557_v10 = vld [vmem:[#allocation8 + $0x48] sm:$0xff]   ;;  %v1560_v15 = vld [vmem:[#allocation8 + $0x20] sm:$0xff]   ;;  %v1567_v22 = vld [vmem:[#allocation8 + $0x70] sm:$0xff]   ;;  %s1672_s7 = scalar_lea.vmem %s1671_s17, 512  ;;  %p1673_p7 = scmp.lt.s32.totalorder %s2093_s28, %s1671_s17 }
  0x77   : > { %v316_v39 = vld [vmem:[#allocation2] sm:$0xf]  ;;  %v1562_v17 = vld [vmem:[#allocation8 + $0x28] sm:$0xff]   ;;  %v1563_v18 = vld [vmem:[#allocation8 + $0x60] sm:$0xff]   ;;  %p1669_p3 = pneg %p1668_p1  ;;  %p1674_p9 = scmp.lt.s32.totalorder %s1672_s7, %s1666_s13 }
  0x78   : > { %v309_v38 = vsel %vm2010_vm8, %v301_v33, %v308_v34  ;;  %v317_v41 = vsel %vm2016_vm9, %v300_v32, %v316_v39  ;;  %v320_v42 = vld [vmem:[#allocation2 + $0x8] sm:$0x1]  ;;  %v1565_v20 = vld [vmem:[#allocation8 + $0x68] sm:$0xff]  }
  0x79   : > { %1338 = vmatpush3.bf16.msra.mxu0 %v1532_v7  ;;  %1358 = vmatpush3.bf16.msra.mxu1 %v1533_v8  ;;  %319 = vst [vmem:[#allocation2 + $0x4] sm:$0xf] %v309_v38  ;;  %318 = vst [vmem:[#allocation2] sm:$0xf] %v317_v41  ;;  %v321_v43 = vsel %vm1981_vm4, %v310_v35, %v320_v42  ;;  %v1555_v7 = vld [vmem:[#allocation8 + $0x40] sm:$0xff]   ;;  %v1556_v8 = vld [vmem:[#allocation8 + $0x10] sm:$0xff]   ;;  %p1675_p12 = por %p1674_p9, %p1673_p7 }
  0x7a   : > { %1339 = vmatprep.subr.bf16.mxu0 %v1745_v0  ;;  %1359 = vmatprep.subr.bf16.mxu1 %v1745_v0  ;;  %322 = vst [vmem:[#allocation2 + $0x8] sm:$0x1] %v321_v43  ;;  %v1569_v23 = vld [vmem:[#allocation8 + $0x78] sm:$0xff]   ;;  %v1572_v9 = vld [vmem:[#allocation8 + $0x88] sm:$0xff]  }
  0x7b   : > { %p1676_p2 = pnand %p1675_p12, %p1669_p3 }
  0x7d   : > { %1340 = vmatpush3.bf16.msra.mxu0 %v1534_v11  ;;  %1360 = vmatpush3.bf16.msra.mxu1 %v1535_v12  ;;  %v1558_v11 = vld [vmem:[#allocation8 + $0x18] sm:$0xff]   ;;  %v1559_v12 = vld [vmem:[#allocation8 + $0x50] sm:$0xff]  }
  0x7e   : > { %1341 = vmatprep.subr.bf16.mxu0 %v1745_v0  ;;  %1361 = vmatprep.subr.bf16.mxu1 %v1745_v0 }
  0x80   : > { %v324_v44 = vld [vmem:[#allocation2 + $0x4] sm:$0xf]  ;;  %v2031_v45 = vld [vmem:[#allocation2] sm:$0xf] }
  0x81   : > { %1342 = vmatpush3.bf16.msra.mxu0 %v1536_v16  ;;  %1362 = vmatpush3.bf16.msra.mxu1 %v1537_v21  ;;  %v1208_v46 = vcombine.low %v2031_v45, %v324_v44  ;;  %v1543_v47 = vld [vmem:[#allocation2 + $0x8] ss:$0 sps:$4 sm:$0x11]   ;;  %v560_v61 = vld [vmem:[#allocation2] sm:$0xe] }
  0x82   : > { %1343 = vmatprep.subr.bf16.mxu0 %v1745_v0  ;;  %1363 = vmatprep.subr.bf16.mxu1 %v1745_v0  ;;  %v376_v50 = vshll.u32 %v1543_v47, 16  ;;  %v1226_v63 = vcombine.low %v560_v61, %v324_v44  ;;  %v583_v3 = vrot.slane %v1543_v47, 1  ;;  %v1561_v16 = vld [vmem:[#allocation8 + $0x58] sm:$0xff]  }
  0x83   : > { %v369_v48 = vshrl.u32 %v1208_v46, 16  ;;  %v371_v49 = vshll.u32 %v1208_v46, 16  ;;  %v1566_v21 = vld [vmem:[#allocation8 + $0x38] sm:$0xff]  }
  0x84   : > { %v378_v52 = vrot.slane %v376_v50, 1  ;;  %v582_v2 = vrot.slane %v1226_v63, 1 }
  0x85   : > { %1344 = vmatpush3.bf16.msra.mxu0 %v1538_v30  ;;  %1364 = vmatpush3.bf16.msra.mxu1 %v1539_v31  ;;  %v373_v51 = vrot.slane %v371_v49, 1 }
  0x86   : > { %1345 = vmatprep.subr.bf16.mxu0 %v1745_v0  ;;  %1365 = vmatprep.subr.bf16.mxu1 %v1745_v0  ;;  %v584_v4 = vsel %vm581_vm11, %v582_v2, %v583_v3 }
  0x87   : > { %v374_v54 = vor.u32 %v373_v51, %v369_v48 }
  0x89   : > { %1346 = vmatpush3.bf16.msra.mxu0 %v1540_v37  ;;  %1366 = vmatpush3.bf16.msra.mxu1 %v1541_v40  ;;  %v379_v55 = vsel %vm367_vm10, %v374_v54, %v378_v52  ;;  %v1235_v37 = vld [vmem:[%s2145_s2] ss:$0 sm:$0xff] }
  0x8a   : > { %1371 = vmatprep.subr.bf16.mxu0 %v1745_v0  ;;  %1391 = vmatprep.subr.bf16.mxu1 %v1745_v0 }
  0x8c   : > { %1368 = vmatmul.mubr.bf16.vlgmr.msra.gmra.mrb[0].mxu1 %v1208_v46  ;;  %1348 = vmatmul.mubr.bf16.vlgmr.msra.gmra.mrb[0].mxu0 %v379_v55 }
  0x8d   : > { %1407 = vmatprep.mubr.msk.bf16.mxu1 %vm1746_vm0, %v1745_v0  ;;  %1372 = vmatpush3.bf16.msra.mxu0 %v1544_v53 }
  0x8e   : > { %1387 = vmatprep.mubr.msk.bf16.mxu0 %vm1746_vm0, %v1745_v0  ;;  %1373 = vmatprep.subr.bf16.mxu0 %v1745_v0 }
  0x8f   : > { %1392 = vmatpush3.bf16.msra.mxu1 %v1555_v7 }
  0x90   : > { %1393 = vmatprep.subr.bf16.mxu1 %v1745_v0 }
  0x91   : > { %1374 = vmatpush3.bf16.msra.mxu0 %v1545_v56 }
  0x92   : > { %1375 = vmatprep.subr.bf16.mxu0 %v1745_v0 }
  0x93   : > { %1394 = vmatpush3.bf16.msra.mxu1 %v1557_v10  ;;  %v1571_v10 = vld [vmem:[#allocation8 + $0x80] sm:$0xff]  }
  0x94   : > { %1395 = vmatprep.subr.bf16.mxu1 %v1745_v0 }
  0x95   : > { %1376 = vmatpush3.bf16.msra.mxu0 %v1546_v57  ;;  %v717_v57 = vld [vmem:[#allocation2 + $0x8] sm:$0x1] }
  0x96   : > { %1377 = vmatprep.subr.bf16.mxu0 %v1745_v0 }
  0x97   : > { %1396 = vmatpush3.bf16.msra.mxu1 %v1559_v12  ;;  %v1574_v12 = vld [vmem:[#allocation8 + $0x98] sm:$0xff]  }
  0x98   : > { %1397 = vmatprep.subr.bf16.mxu1 %v1745_v0 }
  0x99   : > { %1378 = vmatpush3.bf16.msra.mxu0 %v1547_v58 }
  0x9a   : > { %1379 = vmatprep.subr.bf16.mxu0 %v1745_v0 }
  0x9b   : > { %1398 = vmatpush3.bf16.msra.mxu1 %v1561_v16  ;;  %v1576_v16 = vld [vmem:[#allocation8 + $0xa8] sm:$0xff]  }
  0x9c   : > { %1399 = vmatprep.subr.bf16.mxu1 %v1745_v0 }
  0x9d   : > { %1380 = vmatpush3.bf16.msra.mxu0 %v1548_v59 }
  0x9e   : > { %1381 = vmatprep.subr.bf16.mxu0 %v1745_v0 }
  0x9f   : > { %1400 = vmatpush3.bf16.msra.mxu1 %v1563_v18 }
  0xa0   : > { %1401 = vmatprep.subr.bf16.mxu1 %v1745_v0 }
  0xa1   : > { %1382 = vmatpush3.bf16.msra.mxu0 %v1549_v60 }
  0xa2   : > { %1383 = vmatprep.subr.bf16.mxu0 %v1745_v0 }
  0xa3   : > { %1402 = vmatpush3.bf16.msra.mxu1 %v1565_v20  ;;  %v1578_v20 = vld [vmem:[#allocation8 + $0xb8] sm:$0xff]  }
  0xa4   : > { %1403 = vmatprep.subr.bf16.mxu1 %v1745_v0 }
  0xa5   : > { %1384 = vmatpush3.bf16.msra.mxu0 %v1550_v62 }
  0xa6   : > { %1385 = vmatprep.subr.bf16.mxu0 %v1745_v0 }
  0xa7   : > { %1404 = vmatpush3.bf16.msra.mxu1 %v1567_v22 }
  0xa8   : > { %1405 = vmatprep.subr.bf16.mxu1 %v1745_v0 }
  0xa9   : > { %1386 = vmatpush3.bf16.msra.mxu0 %v1551_v1 }
  0xaa   : > { %1411 = vmatprep.subr.bf16.mxu0 %v1745_v0 }
  0xab   : > { %1406 = vmatpush3.bf16.msra.mxu1 %v1569_v23 }
  0xac   : > { %1388 = vmatmul.mubr.bf16.vlgmr.msra.gmra.mrb[4].mxu0 %v584_v4  ;;  %1431 = vmatprep.subr.bf16.mxu1 %v1745_v0 }
  0xad   : > { %1427 = vmatprep.mubr.msk.bf16.mxu0 %vm1746_vm0, %v1745_v0  ;;  %1412 = vmatpush3.bf16.msra.mxu0 %v1553_v5 }
  0xae   : > { %1413 = vmatprep.subr.bf16.mxu0 %v1745_v0 }
  0xb1   : > { %1414 = vmatpush3.bf16.msra.mxu0 %v1554_v6 }
  0xb2   : > { %1415 = vmatprep.subr.bf16.mxu0 %v1745_v0 }
  0xb5   : > { %1416 = vmatpush3.bf16.msra.mxu0 %v1556_v8 }
  0xb6   : > { %1417 = vmatprep.subr.bf16.mxu0 %v1745_v0 }
  0xb9   : > { %1418 = vmatpush3.bf16.msra.mxu0 %v1558_v11  ;;  %v1573_v11 = vld [vmem:[#allocation8 + $0x90] sm:$0xff]  }
  0xba   : > { %1419 = vmatprep.subr.bf16.mxu0 %v1745_v0 }
  0xbd   : > { %1420 = vmatpush3.bf16.msra.mxu0 %v1560_v15  ;;  %v1575_v15 = vld [vmem:[#allocation8 + $0xa0] sm:$0xff]  }
  0xbe   : > { %1421 = vmatprep.subr.bf16.mxu0 %v1745_v0 }
  0xc1   : > { %1422 = vmatpush3.bf16.msra.mxu0 %v1562_v17  ;;  %v1577_v17 = vld [vmem:[#allocation8 + $0xb0] sm:$0xff]  }
  0xc2   : > { %1423 = vmatprep.subr.bf16.mxu0 %v1745_v0 }
  0xc5   : > { %1424 = vmatpush3.bf16.msra.mxu0 %v1564_v19 }
  0xc6   : > { %1425 = vmatprep.subr.bf16.mxu0 %v1745_v0 }
  0xc9   : > { %1426 = vmatpush3.bf16.msra.mxu0 %v1566_v21 }
 0x15f   : > { %v553_v24 = vpop.f32.mrb[0].mxu1  ;;  %v463_v29 = vpop.f32.mrb[0].mxu0 }
 0x160   : > { %v1369_v25 = vpop.f32.mrb[1].mxu1  ;;  %v554_v30 = vadd.f32 %v553_v24, %v463_v29  ;;  %v1349_v31 = vpop.f32.mrb[1].mxu0 }
 0x161   : > { %v556_v26 = vpop.f32.mrb[2].mxu1  ;;  %v466_v32 = vpop.f32.mrb[2].mxu0 }
 0x162   : > { %v1370_v28 = vpop.f32.mrb[3].mxu1  ;;  %v557_v33 = vadd.f32 %v556_v26, %v466_v32  ;;  %v1350_v34 = vpop.f32.mrb[3].mxu0 }
 0x17f   : > { %v668_v35 = vpop.f32.mrb[4].mxu0 }
 0x180   : > { %v675_v38 = vadd.f32 %v668_v35, %v554_v30  ;;  %v1389_v39 = vpop.f32.mrb[5].mxu0 }
 0x181   : > { %v671_v40 = vpop.f32.mrb[6].mxu0 }
 0x182   : > { %v684_v41 = vadd.f32 %v1235_v37, %v675_v38  ;;  %v676_v42 = vadd.f32 %v671_v40, %v557_v33  ;;  %v1390_v43 = vpop.f32.mrb[7].mxu0 }
 0x184   : > { %v686_v44 = vmax.f32 %v684_v41, 0.0  ;;  %v685_v46 = vadd.f32 %v1235_v37, %v676_v42 }
 0x186   : > { %v1274_v47 = vpack.c.bf16 %v686_v44, %v686_v44  ;;  %v687_v48 = vmax.f32 %v685_v46, 0.0 }
 0x188   : > { %v695_v49 = vshrl.u32 %v1274_v47, 16  ;;  %v1275_v50 = vpack.c.bf16 %v687_v48, %v687_v48  ;;  %v698_v52 = vshll.u32 %v1274_v47, 16 }
 0x18a   : > { %v697_v51 = vrot.slane %v695_v49, 7  ;;  %v703_v53 = vshrl.u32 %v1275_v50, 16  ;;  %v706_v56 = vshll.u32 %v1275_v50, 16 }
 0x18c   : > { %v700_v54 = vor.u32 %v698_v52, %v697_v51  ;;  %v705_v55 = vrot.slane %v703_v53, 7  ;;  %v701_v58 = vrot.slane %v697_v51, 4 }
 0x18e   : > { %v714_v59 = vsel %vm2016_vm9, %v700_v54, %v2031_v45  ;;  %v708_v60 = vor.u32 %v706_v56, %v705_v55  ;;  %v710_v61 = vrot.slane %v705_v55, 4 }
 0x18f   : > { %715 = vst [vmem:[#allocation2] sm:$0xf] %v714_v59 }
 0x190   : > { %v709_v62 = vsel %vm2010_vm8, %v701_v58, %v708_v60  ;;  %v718_v63 = vsel %vm1981_vm4, %v710_v61, %v717_v57 }
 0x191   : > { %716 = vst [vmem:[#allocation2 + $0x4] sm:$0xf] %v709_v62  ;;  %719 = vst [vmem:[#allocation2 + $0x8] sm:$0x1] %v718_v63 }
 0x196   : > { %v720_v1 = vld [vmem:[#allocation2] sm:$0xf] }
 0x197   : > { %v956_v18 = vld [vmem:[#allocation2] sm:$0xe] }
 0x198   : > { %v721_v2 = vld [vmem:[#allocation2 + $0x4] sm:$0xf]  ;;  %v1570_v4 = vld [vmem:[#allocation2 + $0x8] ss:$0 sps:$4 sm:$0x11]  }
 0x199   : > { %v1238_v3 = vcombine.low %v720_v1, %v721_v2  ;;  %v772_v6 = vshll.u32 %v1570_v4, 16  ;;  %v1256_v19 = vcombine.low %v956_v18, %v721_v2  ;;  %v978_v22 = vrot.slane %v1570_v4, 1 }
 0x19b   : > { %1428 = vmatmul.mubr.bf16.vlgmr.msra.gmra.mrb[8].mxu0 %v1238_v3  ;;  %v767_v5 = vshll.u32 %v1238_v3, 16  ;;  %v765_v36 = vshrl.u32 %v1238_v3, 16  ;;  %v774_v8 = vrot.slane %v772_v6, 1  ;;  %v977_v21 = vrot.slane %v1256_v19, 1 }
 0x19d   : > { %v769_v45 = vrot.slane %v767_v5, 1  ;;  %v979_v23 = vsel %vm581_vm11, %v977_v21, %v978_v22 }
 0x19f   : > { %v770_v7 = vor.u32 %v769_v45, %v765_v36 }
 0x1a1   : > { %v775_v27 = vsel %vm367_vm10, %v770_v7, %v774_v8 }
 0x1a2   : > { %1408 = vmatmul.mubr.bf16.vlgmr.msra.gmra.mrb[4].mxu1 %v775_v27 }
 0x1a3   : > { %1432 = vmatpush3.bf16.msra.mxu1 %v1571_v10  ;;  %1447 = vmatprep.mubr.msk.bf16.mxu1 %vm1746_vm0, %v1745_v0 }
 0x1a4   : > { %1433 = vmatprep.subr.bf16.mxu1 %v1745_v0 }
 0x1a7   : > { %1434 = vmatpush3.bf16.msra.mxu1 %v1572_v9 }
 0x1a8   : > { %1435 = vmatprep.subr.bf16.mxu1 %v1745_v0 }
 0x1ab   : > { %1436 = vmatpush3.bf16.msra.mxu1 %v1573_v11 }
 0x1ac   : > { %1437 = vmatprep.subr.bf16.mxu1 %v1745_v0 }
 0x1af   : > { %1438 = vmatpush3.bf16.msra.mxu1 %v1574_v12 }
 0x1b0   : > { %1439 = vmatprep.subr.bf16.mxu1 %v1745_v0 }
 0x1b3   : > { %1440 = vmatpush3.bf16.msra.mxu1 %v1575_v15 }
 0x1b4   : > { %1441 = vmatprep.subr.bf16.mxu1 %v1745_v0 }
 0x1b7   : > { %1442 = vmatpush3.bf16.msra.mxu1 %v1576_v16 }
 0x1b8   : > { %1443 = vmatprep.subr.bf16.mxu1 %v1745_v0 }
 0x1bb   : > { %1444 = vmatpush3.bf16.msra.mxu1 %v1577_v17 }
 0x1bc   : > { %1445 = vmatprep.subr.bf16.mxu1 %v1745_v0  ;;  %v1265_v0 = vld [vmem:[%s2147_s4] ss:$0 sm:$0xff] }
 0x1bf   : > { %1446 = vmatpush3.bf16.msra.mxu1 %v1578_v20 }
 0x1c2   : > { %1448 = vmatmul.mubr.bf16.vlgmr.msra.gmra.mrb[8].mxu1 %v979_v23 }
 0x26e   : > { %v949_v24 = vpop.f32.mrb[8].mxu0 }
 0x26f   : > { %v1429_v25 = vpop.f32.mrb[9].mxu0 }
 0x270   : > { %v952_v26 = vpop.f32.mrb[10].mxu0 }
 0x271   : > { %v1430_v28 = vpop.f32.mrb[11].mxu0 }
 0x275   : > { %v859_v29 = vpop.f32.mrb[4].mxu1 }
 0x276   : > { %v950_v30 = vadd.f32 %v949_v24, %v859_v29  ;;  %v1409_v31 = vpop.f32.mrb[5].mxu1 }
 0x277   : > { %v862_v32 = vpop.f32.mrb[6].mxu1 }
 0x278   : > { %v953_v33 = vadd.f32 %v952_v26, %v862_v32  ;;  %v1410_v34 = vpop.f32.mrb[7].mxu1 }
 0x295   : > { %v1063_v35 = vpop.f32.mrb[8].mxu1 }
 0x296   : > { %v1070_v37 = vadd.f32 %v1063_v35, %v950_v30  ;;  %v1449_v38 = vpop.f32.mrb[9].mxu1 }
 0x297   : > { %v1066_v39 = vpop.f32.mrb[10].mxu1 }
 0x298   : > { %v1079_v40 = vadd.f32 %v1265_v0, %v1070_v37  ;;  %v1071_v41 = vadd.f32 %v1066_v39, %v953_v33  ;;  %v1450_v42 = vpop.f32.mrb[11].mxu1 }
 0x29a   : > { %v1081_v43 = vadd.f32 %v1079_v40, %v1993_v13  ;;  %v1080_v44 = vadd.f32 %v1265_v0, %v1071_v41 }
 0x29c   : > { %v1083_v46 = vmax.f32 %v1081_v43, 0.0  ;;  %v1082_v47 = vadd.f32 %v1080_v44, %v1996_v14 }
 0x29e   : > { %1085 = vst [vmem:[%s271_s11] sm:$0xff] %v1083_v46  ;;  %v1084_v48 = vmax.f32 %v1082_v47, 0.0 }
 0x2a0   : > { %1086 = vst [vmem:[%s271_s11 + $0x8] sm:$0xff] %v1084_v48 }
 0x2a1   : > { %1679 = shalt.err (!%p1676_p2)
}
 0x2a2   : > { %s1680_s6 = scalar_lea.hbm %s2099_s9, 256  ;;  %s1684_s8 = scalar_lea.hbm %s2148_s5, 512 }
 0x2a3   : > { %p1681_p13 = scmp.ne.s32.totalorder %s2099_s9, %s1680_s6  ;;  %p1685_p4 = scmp.lt.u32.totalorder %s2099_s9, %s2148_s5 }
 0x2a4   : > { %p1686_p5 = scmp.lt.u32.totalorder %s1684_s8, %s1680_s6  ;;  %p1688_p11 = scmp.lt.u32.totalorder %s1680_s6, %s2099_s9 }
 0x2a5   : > { %p1682_p6 = pnand %p1681_p13, %p2170_p0 }
 0x2a6   : > { %p1687_p8 = por %p1686_p5, %p1685_p4 }
 0x2a7   : > { %p1683_p10 = pneg %p1682_p6 }
 0x2a8   : > { %p1689_p1 = por %p1688_p11, %p1687_p8 }
 0x2aa   : > { %p1690_p3 = pnand %p1689_p1, %p1683_p10 }
 0x2ac   : > { %1693 = shalt.err (!%p1690_p3)
}
 0x2ad   : > { %s1748_s30 = smov 128   ;;  %s1749_s15 = smov 8  }
 0x2ae   : > { %1461 = dma.vmem_to_hbm [thread:$0]  (%p2170_p0), %s2093_s28, 256, %s2099_s9, %s1088_s12, %s1748_s30, %s1748_s30, %s1749_s15  }
 0x2af PF: > { %s1116_s16 = sand.u32 1, %s1724_s18   ;;  %p2171_p7 = scmp.ne.s32.totalorder %s2153_s25, 0 }
 0x2b0   : > { %p2172_p9 = scmp.ge.s32.totalorder %s1736_s21, 2  ;;  %s1117_s13 = scalar_lea.sflag [#allocation5], %s1116_s16 }
 0x2b2   : > { %p1475_p12 = pnand %p2172_p9, %p2171_p7 }
 0x2b4   : > { %1719 = dma.done.wait (!%p1475_p12), %s1117_s13, 256  }
 0x2b5   : > { %1721 = vsyncadd (!%p1475_p12), %s1117_s13, 4294967040  ;;  %p19_p2 = scmp.ge.s32.totalorder %s1890_s14, 4   ;;  %s2173_s18 = smov %s1728_s19 }
 0x2b6   : > { %s2174_s19 = smov %s1732_s20  ;;  %s2175_s20 = smov %s1906_s27 }
 0x2b7   : > { %s2176_s21 = smov %s1890_s14  ;;  %21 = sbr.rel (!%p19_p2) target bundleno = 6 (0x6), region = 97 }
 0x2be   :  { %1122 = vsyncpa [#allocation4], 1 }
 0x2bf   :  { %1124 = vsyncpa [#allocation4 + $0x1], 1 }
 0x2c0   :  { %1125 = vsyncpa [#allocation7], 1 }
 0x2c1   :  { %1126 = vsyncpa [#allocation5], 1 }
 0x2c2   :  { %1128 = vsyncpa [#allocation5 + $0x1], 1 }

</bundles_post_ra>
